<compile_context>
chip_gen: v6e
topology: v6e:2x2x1
jax: 0.10.0
libtpu: 0.0.40
codegen_flags: <defaults>
</compile_context>

<pallas_src>
import jax
import jax.numpy as jnp
from jax.experimental import pallas as pl
from jax.experimental.pallas import tpu as pltpu


def _conv_fc_kernel(kb_ref, w_ref, fk_ref, bias_ref, out_ref):
    """One (b, m-block) tile per grid step — two MXU matmuls + bias.

    kb_ref  : (TM, NOK_pad)      kernel_basis tile (bf16/f32), lane-dense
    w_ref   : (NOK_pad, OC_pad)  per-batch folded weight (x, mask, kernel.weight)
    fk_ref  : (OC_pad, PD_pad)   fiber kernel, reordered and pre-scaled by 1/(C*D), f32
    bias_ref: (1, PD_pad)        bias tiled over p (bias[d] at q = p*D + d), f32
    out_ref : (TM, PD_pad)       f32
    """
    x1 = jnp.dot(kb_ref[...], w_ref[...], preferred_element_type=jnp.float32)
    x2 = jnp.dot(x1, fk_ref[...], preferred_element_type=jnp.float32)
    out_ref[...] = (x2 + bias_ref[...]).astype(out_ref.dtype)


def _round_up(v, m):
    return ((v + m - 1) // m) * m


def _vmem_budget():
    """Generation-aware VMEM budget (v7x has 64 MiB/TC, v5e/v6e have 128 MiB)."""
    try:
        cap = int(pltpu.get_tpu_info().vmem_capacity_bytes)
    except Exception:
        cap = 64 * 1024 * 1024  # conservative fallback (v7x)
    budget = min(cap // 2, 56 * 1024 * 1024)          # for picking the m-tile
    limit_cap = min(int(cap * 0.8), 100 * 1024 * 1024)  # cap for vmem_limit_bytes
    return budget, limit_cap


def separable_fiber_bundle_conv_fc(x, kernel_basis, fiber_kernel_basis,
                                   wk, wf, bias=None, mask=None,
                                   stream_dtype=jnp.bfloat16):
    """Forward of SeparableFiberBundleConvFC (depthwise_separable=False).

    wk  : (C, K)    kernel.weight
    wf  : (D*C, K)  fiber_kernel.weight  (row index q = d*C + c)
    bias: (D,) or None
    """
    B, N, O, C = x.shape
    _, M, _, _, K = kernel_basis.shape
    P = fiber_kernel_basis.shape[0]
    D = wf.shape[0] // C

    f32 = jnp.float32
    NOK, OC, PD = N * O * K, O * C, P * D
    NOK_p, OC_p, PD_p = _round_up(NOK, 128), _round_up(OC, 128), _round_up(PD, 128)

    # ---- wrapper-side prologue (tiny vs. the main conv; all M-independent) ----------
    x32 = x.astype(f32)
    if mask is not None:
        # mask is independent of m: fold it into x (and hence into W) once here.
        x32 = x32 * mask.astype(f32)[:, :, None, None]

    # Per-batch folded weight  W[b,(n,o,k),(p,c)] = delta_{o,p} * x[b,n,p,c] * wk[c,k].
    eye_o = jnp.eye(O, dtype=f32)
    W = jnp.einsum('bnoc,ck,op->bnokpc', x32, wk.astype(f32), eye_o)
    W = W.reshape(B, NOK, OC).astype(stream_dtype)
    W = jnp.pad(W, ((0, 0), (0, NOK_p - NOK), (0, OC_p - OC)))

    # Fiber kernel path (a few KFLOP): reorder to (O*C, P*D) and fold in 1/(C*D).
    fk = jnp.dot(fiber_kernel_basis.reshape(P * O, K).astype(f32), wf.T.astype(f32))
    fk = fk.reshape(P, O, D, C)
    fk_mat = jnp.transpose(fk, (1, 3, 0, 2)).reshape(OC, PD) / float(C * D)
    fk_mat = jnp.pad(fk_mat, ((0, OC_p - OC), (0, PD_p - PD)))

    b_vec = jnp.zeros((D,), f32) if bias is None else bias.astype(f32)
    bias_flat = jnp.pad(jnp.tile(b_vec, (P,)), (0, PD_p - PD)).reshape(1, PD_p)

    # ---- m-tile from a generation-aware VMEM budget ----------------------------------
    sb = jnp.dtype(stream_dtype).itemsize
    # double-buffered kb tile + double-buffered out tile + the (TM, OC_pad) intermediate
    bytes_per_row = 2 * NOK_p * sb + 2 * PD_p * 4 + OC_p * 4
    # double-buffered W + fk + bias (bias sublane-padded to 8 rows)
    fixed_bytes = 2 * NOK_p * OC_p * sb + 2 * OC_p * PD_p * 4 + 2 * 8 * PD_p * 4
    budget, limit_cap = _vmem_budget()
    tm = max(8, min(1024, (budget - fixed_bytes) // max(bytes_per_row, 1)))
    tm = max(8, (tm // 8) * 8)          # multiple of 8 (sublane-aligned MXU LHS / stores)
    tm = min(tm, _round_up(M, 8))
    # keep >= 2 grid steps so both v7x TensorCores get work (no-op on v5e/v6e)
    while B * (-(-M // tm)) < 2 and tm > 8:
        tm = max(8, ((tm // 2) // 8) * 8)
    M_p = _round_up(M, tm)

    # Lane-dense, padded, (optionally) bf16 kernel_basis stream: [B, M_pad, NOK_pad].
    kb = kernel_basis.reshape(B, M, NOK).astype(stream_dtype)
    kb = jnp.pad(kb, ((0, 0), (0, M_p - M), (0, NOK_p - NOK)))

    needed = fixed_bytes + tm * bytes_per_row
    vmem_limit = int(min(limit_cap, max(32 * 1024 * 1024, needed + 8 * 1024 * 1024)))

    out = pl.pallas_call(
        _conv_fc_kernel,
        grid=(B, M_p // tm),
        in_specs=[
            pl.BlockSpec((None, tm, NOK_p), lambda b, mb: (b, mb, 0)),
            pl.BlockSpec((None, NOK_p, OC_p), lambda b, mb: (b, 0, 0)),
            pl.BlockSpec((OC_p, PD_p), lambda b, mb: (0, 0)),
            pl.BlockSpec((1, PD_p), lambda b, mb: (0, 0)),
        ],
        out_specs=pl.BlockSpec((None, tm, PD_p), lambda b, mb: (b, mb, 0)),
        out_shape=jax.ShapeDtypeStruct((B, M_p, PD_p), f32),
        compiler_params=pltpu.CompilerParams(
            dimension_semantics=("parallel", "parallel"),
            vmem_limit_bytes=vmem_limit),
    )(kb, W, fk_mat, bias_flat)

    return out[:, :M, :PD].reshape(B, M, P, D)


if __name__ == "__main__":
    # Small shapes consistent with the module's forward.
    B, N, M, O, P, C, D, K = 2, 8, 8, 4, 4, 8, 32, 8

    key = jax.random.PRNGKey(0)
    k1, k2, k3, k4, k5, k6 = jax.random.split(key, 6)

    x = jax.random.normal(k1, (B, N, O, C), jnp.float32)
    kernel_basis = jax.random.normal(k2, (B, M, N, O, K), jnp.float32)
    fiber_kernel_basis = jax.random.normal(k3, (P, O, K), jnp.float32)

    # Deterministic parameter init (nn.Linear-like scale); bias is zeros, as in __init__.
    wk = jax.random.normal(k4, (C, K), jnp.float32) / jnp.sqrt(K)        # kernel.weight
    wf = jax.random.normal(k5, (D * C, K), jnp.float32) / jnp.sqrt(K)    # fiber_kernel.weight
    bias = jnp.zeros((D,), jnp.float32)

    def ref_forward(x, kernel_basis, fiber_kernel_basis, wk, wf, bias, mask=None):
        # Pure-JAX reference of the PyTorch forward (depthwise_separable=False).
        kern = jnp.einsum('bmnok,ck->bmnoc', kernel_basis, wk)
        if mask is None:
            x1 = jnp.einsum('bnoc,bmnoc->bmoc', x, kern)
        else:
            x1 = jnp.einsum('bnoc,bmnoc,bn->bmoc', x, kern, mask)
        fk = jnp.einsum('pok,qk->poq', fiber_kernel_basis, wf).reshape(P, O, D, C)
        return jnp.einsum('bmoc,podc->bmpd', x1, fk) / (C * D) + bias

    ref = ref_forward(x, kernel_basis, fiber_kernel_basis, wk, wf, bias, None)

    # f32 streaming path: tight tolerance.
    out32 = separable_fiber_bundle_conv_fc(
        x, kernel_basis, fiber_kernel_basis, wk, wf, bias,
        mask=None, stream_dtype=jnp.float32)
    out32 = jax.block_until_ready(out32)
    assert out32.shape == (B, M, P, D), out32.shape
    assert jnp.allclose(out32, ref, atol=1e-4, rtol=1e-4), \
        float(jnp.max(jnp.abs(out32 - ref)))

    # bf16 streaming path (the fast default): f32 accumulation, loosened tolerance.
    out_bf = separable_fiber_bundle_conv_fc(
        x, kernel_basis, fiber_kernel_basis, wk, wf, bias, mask=None)
    out_bf = jax.block_until_ready(out_bf)
    assert jnp.allclose(out_bf, ref, atol=1e-2, rtol=2e-2), \
        float(jnp.max(jnp.abs(out_bf - ref)))

    # masked path (mask folded into the per-batch weight in the wrapper).
    mask = (jax.random.uniform(k6, (B, N)) > 0.3).astype(jnp.float32)
    ref_m = ref_forward(x, kernel_basis, fiber_kernel_basis, wk, wf, bias, mask)
    out_m = separable_fiber_bundle_conv_fc(
        x, kernel_basis, fiber_kernel_basis, wk, wf, bias, mask=mask)
    out_m = jax.block_until_ready(out_m)
    assert jnp.allclose(out_m, ref_m, atol=1e-2, rtol=2e-2), \
        float(jnp.max(jnp.abs(out_m - ref_m)))

    print("KERNEL_OK")
</pallas_src>

<mosaic_0001>
module attributes {stable_mosaic.version = 11 : i64} {
  func.func @_conv_fc_kernel(%arg0: i32, %arg1: i32, %arg2: memref<1x8x256xf32, #tpu.memory_space<vmem>>, %arg3: memref<1x256x128xf32, #tpu.memory_space<vmem>>, %arg4: memref<128x128xf32, #tpu.memory_space<vmem>>, %arg5: memref<1x128xf32, #tpu.memory_space<vmem>>, %arg6: memref<1x8x128xf32, #tpu.memory_space<vmem>>) attributes {dimension_semantics = [#tpu.dimension_semantics<parallel>, #tpu.dimension_semantics<parallel>], iteration_bounds = array<i64: 2, 1>, scalar_prefetch = 0 : i64, scratch_operands = 0 : i64, tpu.core_type = #tpu.core_type<tc>, window_params = [{transform_indices = @transform_0, window_bounds = array<i64: 1, 8, 256>}, {transform_indices = @transform_1, window_bounds = array<i64: 1, 256, 128>}, {pipeline_mode = #tpu.pipeline_mode<synchronous>, transform_indices = @transform_2, window_bounds = array<i64: 128, 128>}, {pipeline_mode = #tpu.pipeline_mode<synchronous>, transform_indices = @transform_3, window_bounds = array<i64: 1, 128>}, {transform_indices = @transform_4, window_bounds = array<i64: 1, 8, 128>}]} {
    %c0 = arith.constant 0 : index
    %c0_0 = arith.constant 0 : index
    %c0_1 = arith.constant 0 : index
    %0 = vector.load %arg2[%c0, %c0_0, %c0_1] : memref<1x8x256xf32, #tpu.memory_space<vmem>>, vector<1x8x256xf32>
    %1 = vector.shape_cast %0 : vector<1x8x256xf32> to vector<8x256xf32>
    %c0_2 = arith.constant 0 : index
    %c0_3 = arith.constant 0 : index
    %c0_4 = arith.constant 0 : index
    %2 = vector.load %arg3[%c0_2, %c0_3, %c0_4] : memref<1x256x128xf32, #tpu.memory_space<vmem>>, vector<1x256x128xf32>
    %3 = vector.shape_cast %2 : vector<1x256x128xf32> to vector<256x128xf32>
    %cst = arith.constant dense<0.000000e+00> : vector<8x128xf32>
    %4 = tpu.matmul %1, %3, %cst {dimension_numbers = #tpu.dot_dimension_numbers<[1], [0], [0], [1], [0, 0, 1, 1], [], []>} : vector<8x256xf32>, vector<256x128xf32>, vector<8x128xf32> -> vector<8x128xf32>
    %c0_5 = arith.constant 0 : index
    %c0_6 = arith.constant 0 : index
    %5 = vector.load %arg4[%c0_5, %c0_6] : memref<128x128xf32, #tpu.memory_space<vmem>>, vector<128x128xf32>
    %cst_7 = arith.constant dense<0.000000e+00> : vector<8x128xf32>
    %6 = tpu.matmul %4, %5, %cst_7 {dimension_numbers = #tpu.dot_dimension_numbers<[1], [0], [0], [1], [0, 0, 1, 1], [], []>} : vector<8x128xf32>, vector<128x128xf32>, vector<8x128xf32> -> vector<8x128xf32>
    %c0_8 = arith.constant 0 : index
    %c0_9 = arith.constant 0 : index
    %7 = vector.load %arg5[%c0_8, %c0_9] : memref<1x128xf32, #tpu.memory_space<vmem>>, vector<1x128xf32>
    %8 = vector.broadcast %7 : vector<1x128xf32> to vector<8x128xf32>
    %9 = arith.addf %6, %8 : vector<8x128xf32>
    %c0_10 = arith.constant 0 : index
    %c0_11 = arith.constant 0 : index
    %c0_12 = arith.constant 0 : index
    %10 = vector.load %arg6[%c0_10, %c0_11, %c0_12] : memref<1x8x128xf32, #tpu.memory_space<vmem>>, vector<1x8x128xf32>
    %11 = vector.shape_cast %10 : vector<1x8x128xf32> to vector<8x128xf32>
    %12 = vector.shape_cast %9 : vector<8x128xf32> to vector<1x8x128xf32>
    tpu.vector_store %arg6[%c0_10, %c0_11, %c0_12], %12 {strides = array<i32>} : memref<1x8x128xf32, #tpu.memory_space<vmem>>, vector<1x8x128xf32>,
    return
  }
  func.func @transform_0(%arg0: i32, %arg1: i32) -> (i32, i32, i32) {
    %c0_i32 = arith.constant 0 : i32
    %c0_i32_0 = arith.constant 0 : i32
    return %arg0, %arg1, %c0_i32 : i32, i32, i32
  }
  func.func @transform_1(%arg0: i32, %arg1: i32) -> (i32, i32, i32) {
    %c0_i32 = arith.constant 0 : i32
    %c0_i32_0 = arith.constant 0 : i32
    %c0_i32_1 = arith.constant 0 : i32
    return %arg0, %c0_i32, %c0_i32_0 : i32, i32, i32
  }
  func.func @transform_2(%arg0: i32, %arg1: i32) -> (i32, i32) {
    %c0_i32 = arith.constant 0 : i32
    %c0_i32_0 = arith.constant 0 : i32
    %c0_i32_1 = arith.constant 0 : i32
    return %c0_i32, %c0_i32_0 : i32, i32
  }
  func.func @transform_3(%arg0: i32, %arg1: i32) -> (i32, i32) {
    %c0_i32 = arith.constant 0 : i32
    %c0_i32_0 = arith.constant 0 : i32
    %c0_i32_1 = arith.constant 0 : i32
    return %c0_i32, %c0_i32_0 : i32, i32
  }
  func.func @transform_4(%arg0: i32, %arg1: i32) -> (i32, i32, i32) {
    %c0_i32 = arith.constant 0 : i32
    %c0_i32_0 = arith.constant 0 : i32
    return %arg0, %arg1, %c0_i32 : i32, i32, i32
  }
}

</mosaic_0001>

<bundles_post_ra>
// kernel: tpu_custom_call.1
= control target key start
LH: loop header
LB: loop body
LE: loop exit
PB: predicated region body
PF: predicated region fallthrough
CT: control target
= control target key end

     0   :  { %s1263_s0 = inlined_call_operand.hbm [shape: f32[2,8,256], index: 0, kind: input, shape index: {}]   ;;  %s1264_s1 = inlined_call_operand.hbm [shape: f32[2,256,128], index: 1, kind: input, shape index: {}]   ;;  %s1265_s2 = inlined_call_operand.hbm [shape: f32[128,128], index: 2, kind: input, shape index: {}]   ;;  %s1266_s3 = inlined_call_operand.vmem [shape: f32[1,128], index: 3, kind: input, shape index: {}]   ;;  %s1267_s4 = inlined_call_operand.hbm [shape: f32[2,8,128], index: 4, kind: output, shape index: {}]  }
   0x1   :  { %1272 = sst [smem:[#allocation15_spill]] %s1263_s0 }
   0x2   :  { %1273 = sst [smem:[#allocation16_spill]] %s1265_s2 }
   0x3   :  { %9 = vsyncpa [#allocation3], 0 }
   0x4   :  { %11 = vsyncpa [#allocation3 + $0x1], 0 }
   0x5   :  { %12 = vsyncpa [#allocation6], 0 }
   0x6   :  { %14 = vsyncpa [#allocation6 + $0x1], 0 }
   0x7   :  { %15 = vsyncpa [#allocation4], 0 }
   0x8   :  { %17 = vsyncpa [#allocation4 + $0x1], 0  ;;  %s1010_s15 = smov 0   ;;  %s1012_s16 = smov 0  }
   0x9   :  { %s1014_s17 = smov 0   ;;  %s1016_s18 = smov 0  }
   0xa   :  { %s1018_s19 = smov 0   ;;  %s1020_s20 = smov 0  }
   0xb LB: > { %1274 = sst [smem:[#allocation13_spill]] %s971_s19  ;;  %s1041_s21 = sadd.s32 4294967295, %s975_s20   ;;  %s975_s20 = sphi %s1020_s20, %s23_s20   ;;  %s971_s19 = sphi %s1018_s19, %s1290_s19   ;;  %s967_s18 = sphi %s1016_s18, %s1289_s18   ;;  %s963_s17 = sphi %s1014_s17, %s1293_s17   ;;  %s959_s16 = sphi %s1012_s16, %s1292_s16   ;;  %s955_s15 = sphi %s1010_s15, %s1291_s15  }
   0xc   : > { %s614_s22 = sadd.s32 4294967294, %s975_s20   ;;  %p57_p0 = scmp.ne.s32.totalorder %s959_s16, %s955_s15 }
   0xd   : > { %p58_p1 = scmp.eq.s32.totalorder %s1041_s21, 0  ;;  %p157_p3 = scmp.eq.s32.totalorder %s614_s22, 1 }
   0xe   : > { %p615_p5 = scmp.ge.s32.totalorder %s975_s20, 1  ;;  %p164_p7 = scmp.lt.s32.totalorder %s975_s20, 3 }
   0xf   : > { %p1050_p4 = por %p58_p1, %p57_p0  ;;  %p1055_p6 = por %p157_p3, %p57_p0 }
  0x10   : > { %p1060_p8 = pnand %p615_p5, %p164_p7  ;;  %s977_s26 = smov [#allocation7]  }
  0x11   : > { %s1276_s24 = scalar_select %p1055_p6, 1, 0 }
  0x12   : > { %s176_s27 = sshll.u32 %s977_s26, 4  ;;  %p733_p9 = pneg %p1060_p8  ;;  %s177_s27 = int_to_ptr.vmem [resolvable:$true] %s176_s27 }
  0x13   : > { %p617_p10 = scmp.ge.s32.totalorder %s975_s20, 2  ;;  %s35_s29 = sadd.s32 1, %s971_s19 }
  0x14   : > { %p1069_p11 = pnand %p733_p9, %p58_p1  ;;  %s816_s30 = scalar_lea.vmem %s177_s27, 2048 }
  0x15   : > { %p817_p13 = scmp.ne.s32.totalorder %s177_s27, %s816_s30  ;;  %p824_p5 = scmp.lt.s32.totalorder %s177_s27, %s177_s27 }
  0x16   : > { %p807_p12 = pneg %p1069_p11  ;;  %p825_p7 = scmp.lt.s32.totalorder %s816_s30, %s816_s30 }
  0x18   : > { %p819_p0 = pnand %p817_p13, %p807_p12  ;;  %p826_p2 = por %p825_p7, %p824_p5 }
  0x1a   : > { %p820_p3 = pneg %p819_p0 }
  0x1c   : > { %p827_p6 = pnand %p826_p2, %p820_p3 }
  0x1e   : > { %830 = shalt.err (!%p827_p6)
}
  0x1f   : > { %s1268_s5 = smov 128   ;;  %s1269_s6 = smov 8  }
  0x20   : > { %s1279_s2 = sld [smem:[#allocation16_spill]]  ;;  %p37_p2 = scmp.ge.s32.totalorder %s35_s29, 2 }
  0x21   : > { %s44_s9 = sadd.s32 1, %s963_s17  ;;  %p51_p6 = scmp.ne.s32.totalorder %s963_s17, %s959_s16 }
  0x22   : > { %p52_p9 = scmp.eq.s32.totalorder %s975_s20, 0  ;;  %s1295_s29 = smov (%p37_p2, %s35_s29), 0 }
  0x23   : > { %1280 = sst [smem:[#allocation14_spill]] %s1295_s29  ;;  %p1282_p13 = scmp.eq.s32.totalorder %s1041_s21, 1 }
  0x24   : > { %p1090_p12 = por %p52_p9, %p51_p6  ;;  %s39_s12 = ssub.s32 %s971_s19, %s1295_s29 }
  0x25   : > { %p1096_p0 = por %p1282_p13, %p51_p6  ;;  %p42_p3 = scmp.eq.s32.totalorder %s39_s12, 0 }
  0x26   : > { %736 = dma.hbm_to_vmem [thread:$0]  (!%p1069_p11), %s1279_s2, 2048, %s177_s27, [#allocation6], %s1268_s5, %s1268_s5, %s1269_s6  }
  0x27   : > { %p749_p11 = scmp.lt.s32.totalorder %s975_s20, 2  ;;  %s193_s13 = sand.u32 1, %s963_s17  }
  0x28   : > { %s618_s14 = sshll.u32 %s193_s13, 4  ;;  %s634_s26 = sshll.u32 %s971_s19, 8 }
  0x29   : > { %s1105_s22 = scalar_select %p42_p3, %s963_s17, %s44_s9  }
  0x2a   : > { %s1284_s0 = sld [smem:[#allocation15_spill]]  ;;  %s197_s7 = scalar_lea.vmem [#allocation2], %s618_s14 }
  0x2b   : > { %s207_s8 = sshll.u32 %s197_s7, 4  ;;  %p1113_p5 = pnand %p749_p11, %p1090_p12  ;;  %s208_s8 = int_to_ptr.vmem [resolvable:$true] %s207_s8 }
  0x2c   : > { %s621_s12 = sshll.u32 %s193_s13, 8  ;;  %s635_s6 = sshll.u32 %s971_s19, 12 }
  0x2d   : > { %s194_s2 = scalar_lea.sflag [#allocation3], %s193_s13  ;;  %p833_p7 = pneg %p1113_p5 }
  0x2e   : > { %s844_s9 = scalar_lea.vmem %s208_s8, 256  ;;  %s980_s14 = smov [#allocation2]  }
  0x2f   : > { %p845_p2 = scmp.ne.s32.totalorder %s208_s8, %s844_s9 }
  0x30   : > { %s205_s30 = scalar_lea.hbm %s1284_s0, %s634_s26  ;;  %s849_s26 = sshll.u32 %s980_s14, 4  ;;  %s850_s26 = int_to_ptr.vmem [resolvable:$false] %s849_s26 }
  0x31   : > { %p847_p6 = pnand %p845_p2, %p833_p7  ;;  %s851_s10 = scalar_lea.vmem %s850_s26, 512 }
  0x32   : > { %p852_p12 = scmp.lt.s32.totalorder %s208_s8, %s850_s26  ;;  %p853_p13 = scmp.lt.s32.totalorder %s851_s10, %s844_s9 }
  0x33   : > { %p848_p9 = pneg %p847_p6 }
  0x34   : > { %p854_p11 = por %p853_p13, %p852_p12 }
  0x36   : > { %p855_p3 = pnand %p854_p11, %p848_p9 }
  0x38   : > { %858 = shalt.err (!%p855_p3)
}
  0x39   : > { %740 = dma.hbm_to_vmem [thread:$0]  (!%p1113_p5), %s205_s30, 256, %s208_s8, %s194_s2  }
  0x3a   : > { %s218_s13 = scalar_lea.vmem [#allocation5], %s621_s12  ;;  %s214_s28 = sand.u32 1, %s975_s20  }
  0x3b   : > { %s225_s27 = sshll.u32 %s218_s13, 4  ;;  %s224_s14 = scalar_lea.hbm %s1264_s1, %s635_s6  ;;  %s226_s27 = int_to_ptr.vmem [resolvable:$true] %s225_s27 }
  0x3c   : > { %s215_s29 = scalar_lea.sflag [#allocation6], %s214_s28  ;;  %s872_s19 = scalar_lea.vmem %s226_s27, 4096 }
  0x3d   : > { %p873_p2 = scmp.ne.s32.totalorder %s226_s27, %s872_s19  ;;  %s981_s9 = smov [#allocation5]  }
  0x3e   : > { %s877_s26 = sshll.u32 %s981_s9, 4  ;;  %s878_s26 = int_to_ptr.vmem [resolvable:$false] %s877_s26 }
  0x3f   : > { %p875_p6 = pnand %p873_p2, %p833_p7  ;;  %s879_s10 = scalar_lea.vmem %s878_s26, 8192 }
  0x40   : > { %p880_p12 = scmp.lt.s32.totalorder %s226_s27, %s878_s26  ;;  %p881_p13 = scmp.lt.s32.totalorder %s879_s10, %s872_s19 }
  0x41   : > { %p876_p9 = pneg %p875_p6 }
  0x42   : > { %p882_p11 = por %p881_p13, %p880_p12 }
  0x44   : > { %p883_p3 = pnand %p882_p11, %p876_p9 }
  0x46   : > { %886 = shalt.err (!%p883_p3)
}
  0x47   : > { %s1286_s0 = smov 8   ;;  %s1287_s2 = smov 128  }
  0x48   : > { %743 = dma.hbm_to_vmem [thread:$0]  (!%p1113_p5), %s224_s14, 4096, %s226_s27, %s215_s29, %s1287_s2, %s1287_s2, %s1286_s0  }
  0x49   : > { %237 = sbr.rel (%p1060_p8) target bundleno = 522 (0x20a), region = 36  ;;  %s1140_s6 = sand.u32 (!%p1060_p8), 1, %s959_s16  }
  0x4a   : > { %s625_s30 = sshll.u32 (!%p1060_p8), %s1140_s6, 4  ;;  %s240_s19 = scalar_lea.sflag (!%p1060_p8), [#allocation3], %s1140_s6 }
  0x4b   : > { %s1144_s8 = scalar_lea.vmem (!%p1060_p8), [#allocation2], %s625_s30 }
  0x4e   : > { %938 = dma.done.wait (%p1050_p4), %s240_s19, 256  }
  0x4f   : > { %940 = vsyncadd (%p1050_p4), %s240_s19, 4294967040  ;;  %s248_s25 = sand.u32 1, %s1041_s21   ;;  %s626_s29 = sshll.u32 %s1140_s6, 8 }
  0x50   : > { %s249_s5 = scalar_lea.sflag [#allocation6], %s248_s25  ;;  %s1152_s12 = scalar_lea.vmem [#allocation5], %s626_s29 }
  0x51   : > { %942 = dma.done.wait (%p1050_p4), %s249_s5, 4096  }
  0x52   : > { %944 = vsyncadd (%p1050_p4), %s249_s5, 4294963200 }
  0x53   : > { %946 = dma.done.wait (%p58_p1), [#allocation6], 2048  }
  0x54   : > { %948 = vsyncadd (%p58_p1), [#allocation6], 4294965248  ;;  %v982_v0 = vmov 0.0   ;;  %v319_v1 = vld [vmem:[%s1152_s12 + $0xf8] sm:$0xff]  ;;  %v318_v3 = vld [vmem:[%s1152_s12 + $0xf0] sm:$0xff]  ;;  %vm983_vm0 = vmmov 0  }
  0x55   : > { %688 = vmatprep.subr.mxu1 %v982_v0  ;;  %v303_v2 = vld [vmem:[%s1152_s12 + $0x78] sm:$0xff]  ;;  %636 = vmatprep.subr.mxu0 %v319_v1  ;;  %v302_v4 = vld [vmem:[%s1152_s12 + $0x70] sm:$0xff]  ;;  %v317_v5 = vld [vmem:[%s1152_s12 + $0xe8] sm:$0xff]  ;;  %s628_s21 = sshll.u32 %s1140_s6, 3  ;;  %s631_s27 = sshll.u32 %s967_s18, 7 }
  0x56   : > { %637 = vmatpush3.msra.mxu0 %v303_v2  ;;  %v301_v6 = vld [vmem:[%s1152_s12 + $0x68] sm:$0xff]  ;;  %v316_v7 = vld [vmem:[%s1152_s12 + $0xe0] sm:$0xff]  ;;  %v315_v9 = vld [vmem:[%s1152_s12 + $0xd8] sm:$0xff]  ;;  %720 = vmatprep.mubr.msk.f32.mxu1 %vm983_vm0, %v982_v0  ;;  %s285_s28 = scalar_lea.vmem [#allocation8], %s628_s21  ;;  %s1221_s26 = scalar_lea.hbm %s1267_s4, %s631_s27 }
  0x57   : > { %638 = vmatprep.subr.mxu0 %v318_v3  ;;  %v300_v8 = vld [vmem:[%s1152_s12 + $0x60] sm:$0xff]  ;;  %v299_v10 = vld [vmem:[%s1152_s12 + $0x58] sm:$0xff]  ;;  %v314_v11 = vld [vmem:[%s1152_s12 + $0xd0] sm:$0xff]  ;;  %s499_s7 = sshll.u32 %s285_s28, 4  ;;  %s485_s10 = scalar_lea.sflag [#allocation4], %s1140_s6  ;;  %s500_s7 = int_to_ptr.vmem [resolvable:$true] %s499_s7 }
  0x58   : > { %639 = vmatpush3.msra.mxu0 %v302_v4  ;;  %v298_v12 = vld [vmem:[%s1152_s12 + $0x50] sm:$0xff]  ;;  %v313_v13 = vld [vmem:[%s1152_s12 + $0xc8] sm:$0xff]  ;;  %v405_v16 = vld [vmem:[#allocation7 + $0x78] sm:$0xff]  ;;  %s887_s0 = scalar_lea.vmem %s500_s7, 128  ;;  %s984_s2 = smov [#allocation8]  }
  0x59   : > { %640 = vmatprep.subr.mxu0 %v317_v5  ;;  %v287_v14 = vld [vmem:[%s1144_s8 + $0x8] sm:$0xff]  ;;  %v404_v17 = vld [vmem:[#allocation7 + $0x70] sm:$0xff]  ;;  %v312_v18 = vld [vmem:[%s1152_s12 + $0xc0] sm:$0xff]  ;;  %689 = vmatpush3.msra.mxu1 %v405_v16  ;;  %p888_p1 = scmp.ne.s32.totalorder %s500_s7, %s887_s0  ;;  %s891_s18 = sshll.u32 %s984_s2, 4  ;;  %s892_s18 = int_to_ptr.vmem [resolvable:$false] %s891_s18 }
  0x5a   : > { %641 = vmatpush3.msra.mxu0 %v301_v6  ;;  %v297_v15 = vld [vmem:[%s1152_s12 + $0x48] sm:$0xff]  ;;  %384 = vmatprep.mubr.f32.mxu0 %v287_v14  ;;  %v296_v19 = vld [vmem:[%s1152_s12 + $0x40] sm:$0xff]  ;;  %v311_v21 = vld [vmem:[%s1152_s12 + $0xb8] sm:$0xff]  ;;  %s893_s30 = scalar_lea.vmem %s892_s18, 256  ;;  %p894_p5 = scmp.lt.s32.totalorder %s500_s7, %s892_s18 }
  0x5b   : > { %642 = vmatprep.subr.mxu0 %v316_v7  ;;  %690 = vmatprep.subr.mxu1 %v982_v0  ;;  %v403_v20 = vld [vmem:[#allocation7 + $0x68] sm:$0xff]  ;;  %v295_v22 = vld [vmem:[%s1152_s12 + $0x38] sm:$0xff]  ;;  %v402_v23 = vld [vmem:[#allocation7 + $0x60] sm:$0xff]  ;;  %p889_p4 = pnand %p888_p1, %p1096_p0  ;;  %p895_p7 = scmp.lt.s32.totalorder %s893_s30, %s887_s0 }
  0x5c   : > { %643 = vmatpush3.msra.mxu0 %v300_v8  ;;  %691 = vmatpush3.msra.mxu1 %v404_v17  ;;  %v310_v24 = vld [vmem:[%s1152_s12 + $0xb0] sm:$0xff]  ;;  %v401_v26 = vld [vmem:[#allocation7 + $0x58] sm:$0xff]  ;;  %v309_v27 = vld [vmem:[%s1152_s12 + $0xa8] sm:$0xff] }
  0x5d   : > { %644 = vmatprep.subr.mxu0 %v315_v9  ;;  %692 = vmatprep.subr.mxu1 %v982_v0  ;;  %v294_v25 = vld [vmem:[%s1152_s12 + $0x30] sm:$0xff]  ;;  %v293_v28 = vld [vmem:[%s1152_s12 + $0x28] sm:$0xff]  ;;  %v308_v30 = vld [vmem:[%s1152_s12 + $0xa0] sm:$0xff]  ;;  %p890_p8 = pneg %p889_p4  ;;  %p896_p2 = por %p895_p7, %p894_p5 }
  0x5e   : > { %645 = vmatpush3.msra.mxu0 %v299_v10  ;;  %693 = vmatpush3.msra.mxu1 %v403_v20  ;;  %v400_v29 = vld [vmem:[#allocation7 + $0x50] sm:$0xff]  ;;  %v292_v31 = vld [vmem:[%s1152_s12 + $0x20] sm:$0xff]  ;;  %v399_v32 = vld [vmem:[#allocation7 + $0x48] sm:$0xff] }
  0x5f   : > { %646 = vmatprep.subr.mxu0 %v314_v11  ;;  %694 = vmatprep.subr.mxu1 %v982_v0  ;;  %v307_v33 = vld [vmem:[%s1152_s12 + $0x98] sm:$0xff]  ;;  %v398_v35 = vld [vmem:[#allocation7 + $0x40] sm:$0xff]  ;;  %v306_v36 = vld [vmem:[%s1152_s12 + $0x90] sm:$0xff]  ;;  %p897_p6 = pnand %p896_p2, %p890_p8 }
  0x60   : > { %647 = vmatpush3.msra.mxu0 %v298_v12  ;;  %695 = vmatpush3.msra.mxu1 %v402_v23  ;;  %v291_v34 = vld [vmem:[%s1152_s12 + $0x18] sm:$0xff]  ;;  %v290_v37 = vld [vmem:[%s1152_s12 + $0x10] sm:$0xff]  ;;  %v305_v39 = vld [vmem:[%s1152_s12 + $0x88] sm:$0xff] }
  0x61   : > { %648 = vmatprep.subr.mxu0 %v313_v13  ;;  %696 = vmatprep.subr.mxu1 %v982_v0  ;;  %v397_v38 = vld [vmem:[#allocation7 + $0x38] sm:$0xff]  ;;  %v289_v40 = vld [vmem:[%s1152_s12 + $0x8] sm:$0xff]  ;;  %v396_v41 = vld [vmem:[#allocation7 + $0x30] sm:$0xff] }
  0x62   : > { %649 = vmatpush3.msra.mxu0 %v297_v15  ;;  %697 = vmatpush3.msra.mxu1 %v401_v26  ;;  %v304_v42 = vld [vmem:[%s1152_s12 + $0x80] sm:$0xff]  ;;  %v395_v44 = vld [vmem:[#allocation7 + $0x28] sm:$0xff]  ;;  %v393_v47 = vld [vmem:[#allocation7 + $0x18] sm:$0xff] }
  0x63   : > { %650 = vmatprep.subr.mxu0 %v312_v18  ;;  %698 = vmatprep.subr.mxu1 %v982_v0  ;;  %v288_v43 = vld [vmem:[%s1152_s12] sm:$0xff]  ;;  %v392_v48 = vld [vmem:[#allocation7 + $0x10] sm:$0xff]  ;;  %v391_v49 = vld [vmem:[#allocation7 + $0x8] sm:$0xff] }
  0x64   : > { %651 = vmatpush3.msra.mxu0 %v296_v19  ;;  %699 = vmatpush3.msra.mxu1 %v400_v29  ;;  %v286_v45 = vld [vmem:[%s1144_s8] sm:$0xff] }
  0x65   : > { %652 = vmatprep.subr.mxu0 %v311_v21  ;;  %700 = vmatprep.subr.mxu1 %v982_v0  ;;  %v394_v46 = vld [vmem:[#allocation7 + $0x20] sm:$0xff] }
  0x66   : > { %653 = vmatpush3.msra.mxu0 %v295_v22  ;;  %701 = vmatpush3.msra.mxu1 %v399_v32  ;;  %v390_v50 = vld [vmem:[#allocation7] sm:$0xff] }
  0x67   : > { %654 = vmatprep.subr.mxu0 %v310_v24  ;;  %702 = vmatprep.subr.mxu1 %v982_v0  ;;  %v629_v54 = vld [vmem:[%s1266_s3] ss:$0 sm:$0xff] }
  0x68   : > { %655 = vmatpush3.msra.mxu0 %v294_v25  ;;  %703 = vmatpush3.msra.mxu1 %v398_v35 }
  0x69   : > { %656 = vmatprep.subr.mxu0 %v309_v27  ;;  %704 = vmatprep.subr.mxu1 %v982_v0 }
  0x6a   : > { %657 = vmatpush3.msra.mxu0 %v293_v28  ;;  %705 = vmatpush3.msra.mxu1 %v397_v38 }
  0x6b   : > { %658 = vmatprep.subr.mxu0 %v308_v30  ;;  %706 = vmatprep.subr.mxu1 %v982_v0 }
  0x6c   : > { %659 = vmatpush3.msra.mxu0 %v292_v31  ;;  %707 = vmatpush3.msra.mxu1 %v396_v41 }
  0x6d   : > { %660 = vmatprep.subr.mxu0 %v307_v33  ;;  %708 = vmatprep.subr.mxu1 %v982_v0 }
  0x6e   : > { %661 = vmatpush3.msra.mxu0 %v291_v34  ;;  %709 = vmatpush3.msra.mxu1 %v395_v44 }
  0x6f   : > { %662 = vmatprep.subr.mxu0 %v306_v36  ;;  %710 = vmatprep.subr.mxu1 %v982_v0 }
  0x70   : > { %663 = vmatpush3.msra.mxu0 %v290_v37  ;;  %711 = vmatpush3.msra.mxu1 %v394_v46 }
  0x71   : > { %664 = vmatprep.subr.mxu0 %v305_v39  ;;  %712 = vmatprep.subr.mxu1 %v982_v0 }
  0x72   : > { %665 = vmatpush3.msra.mxu0 %v289_v40  ;;  %713 = vmatpush3.msra.mxu1 %v393_v47 }
  0x73   : > { %666 = vmatprep.subr.mxu0 %v304_v42  ;;  %714 = vmatprep.subr.mxu1 %v982_v0 }
  0x74   : > { %667 = vmatpush3.msra.mxu0 %v288_v43  ;;  %715 = vmatpush3.msra.mxu1 %v392_v48 }
  0x75   : > { %385 = vmatmul.mubr.f32.vlgmr.msra.gmra.mxu0 %v286_v45  ;;  %716 = vmatprep.subr.mxu1 %v982_v0 }
  0x76   : > { %717 = vmatpush3.msra.mxu1 %v391_v49 }
  0x77   : > { %718 = vmatprep.subr.mxu1 %v982_v0 }
  0x78   : > { %719 = vmatpush3.msra.mxu1 %v390_v50 }
 0x135   : > { %v668_v51 = vpop.f32.mrf.mxu0 }
 0x137   : > { %v669_v52 = vpop.f32.mrf.mxu0 }
 0x138   : > { %v670_v53 = vadd.f32 %v669_v52, %v668_v51 }
 0x13a   : > { %721 = vmatmul.mubr.f32.vlgmr.msra.gmra.mxu1 %v670_v53 }
 0x1fa   : > { %v479_v55 = vpop.f32.mrf.mxu1 }
 0x1fb   : > { %v480_v56 = vadd.f32 %v629_v54, %v479_v55 }
 0x1fc   : > { %v722_v57 = vpop.f32.mrf.mxu1 }
 0x1fd   : > { %483 = vst [vmem:[%s285_s28] sm:$0xff] %v480_v56 }
 0x1fe   : > { %900 = shalt.err (!%p897_p6)
}
 0x1ff   : > { %s901_s19 = scalar_lea.hbm %s1221_s26, 128  ;;  %s905_s25 = scalar_lea.hbm %s1267_s4, 256 }
 0x200   : > { %p902_p9 = scmp.ne.s32.totalorder %s1221_s26, %s901_s19  ;;  %p906_p11 = scmp.lt.s32.totalorder %s1221_s26, %s1267_s4 }
 0x201   : > { %p907_p3 = scmp.lt.s32.totalorder %s905_s25, %s901_s19 }
 0x202   : > { %p903_p12 = pnand %p902_p9, %p1096_p0 }
 0x203   : > { %p908_p1 = por %p907_p3, %p906_p11 }
 0x204   : > { %p904_p13 = pneg %p903_p12 }
 0x206   : > { %p909_p4 = pnand %p908_p1, %p904_p13 }
 0x208   : > { %912 = shalt.err (!%p909_p4)
}
 0x209   : > { %731 = dma.vmem_to_hbm [thread:$0]  (%p1096_p0), %s500_s7, 128, %s1221_s26, %s485_s10  }
 0x20a PF: > { %s511_s12 = sand.u32 1, %s955_s15   ;;  %p1288_p8 = scmp.ne.s32.totalorder %s1276_s24, 0 }
 0x20b   : > { %s512_s21 = scalar_lea.sflag [#allocation4], %s511_s12 }
 0x20c   : > { %p745_p5 = pnand %p617_p10, %p1288_p8 }
 0x20e   : > { %p746_p7 = pneg %p745_p5 }
 0x210   : > { %950 = dma.done.wait (%p746_p7), %s512_s21, 128  }
 0x211   : > { %952 = vsyncadd (%p746_p7), %s512_s21, 4294967168  ;;  %s23_s20 = sadd.s32 1, %s975_s20   ;;  %s1289_s18 = sld [smem:[#allocation13_spill]] }
 0x212   : > { %p20_p2 = scmp.ge.s32.totalorder %s23_s20, 4   ;;  %s1290_s19 = sld [smem:[#allocation14_spill]] }
 0x213   : > { %s1291_s15 = smov %s959_s16  ;;  %s1292_s16 = smov %s963_s17 }
 0x214   : > { %s1293_s17 = smov %s1105_s22  ;;  %22 = sbr.rel (!%p20_p2) target bundleno = 11 (0xb), region = 98 }
 0x219   :  { %517 = vsyncpa [#allocation3], 1 }
 0x21a   :  { %519 = vsyncpa [#allocation3 + $0x1], 1 }
 0x21b   :  { %520 = vsyncpa [#allocation6], 1 }
 0x21c   :  { %522 = vsyncpa [#allocation6 + $0x1], 1 }
 0x21d   :  { %523 = vsyncpa [#allocation4], 1 }
 0x21e   :  { %525 = vsyncpa [#allocation4 + $0x1], 1 }

</bundles_post_ra>
